<compile_context>
chip_gen: v7x
topology: tpu7x:2x2x1
jax: 0.10.0
libtpu: 0.0.40
codegen_flags: <defaults>
</compile_context>

<pallas_src>
import numpy as np
import jax
import jax.numpy as jnp
from jax.experimental import pallas as pl
from jax.experimental.pallas import tpu as pltpu


def _elu(v):
    """ELU(alpha=1) with a single EUP transcendental per element.

    The min() guards the un-selected branch of where() against exp overflow.
    Precision of exp(x)-1 vs expm1(x) near 0- is far below the test tolerance.
    """
    return jnp.where(v > 0.0, v, jnp.exp(jnp.minimum(v, 0.0)) - 1.0)


def _actor_fused_kernel(obs_ref, w1x_ref, b1x_ref, w2x_ref, b2x_ref,
                        w3x_ref, b3_ref, w4_ref, b4_ref, o_ref,
                        p1_ref, a1_ref, p2_ref, a2_ref, flat_ref):
    """Whole Actor forward, single grid-less invocation, everything in VMEM.

    Conv-stage activation layout: row r = b*8 + i (batch, spatial row),
    lane l = j*8 + c (spatial col, channel).  Each layer is ONE MXU matmul
    against an "im2col-folded" dense weight built in prepare_kernel_params().

      obs_ref : (B,1,10,10) f32   raw NCHW observation (no wrapper glue)
      w1x_ref : (30, 64)   f32    conv1: rows (di, j'), cols (j, c)
      w2x_ref : (192, 64)  f32    conv2: rows (di, j, cin), cols (w, cout)
      w3x_ref : (384, 128) bf16   Linear(288,128) with torch NCHW Flatten
                                  folded in; rows with w in {6,7} exactly zero
      w4_ref  : (128, OUT) f32
      o_ref   : (B, OUT)   f32    logits - the only HBM write of the model
    Scratch (f32): p1 (B*8,30), a1 (B*8+8,64), p2 (B*8,192), a2 (B*8,64),
                   flat (B,384).
    """
    B = o_ref.shape[0]
    R = B * 8

    # ---- Conv1 im2col, built fully in-kernel ------------------------------
    # p1[b*8+i, di*10 + j'] = obs[b, 0, i+di, j']
    for b in range(B):
        for di in range(3):
            p1_ref[b * 8:(b + 1) * 8, di * 10:di * 10 + 10] = \
                obs_ref[b, 0, di:di + 8, :]

    # ---- Conv1: one MXU matmul over all 9 taps ----------------------------
    a1 = _elu(jnp.dot(p1_ref[...], w1x_ref[...],
                      preferred_element_type=jnp.float32) + b1x_ref[...])
    a1_ref[0:R, :] = a1                                   # rows (b,i), lanes (j,c)
    a1_ref[R:, :] = jnp.zeros((a1_ref.shape[0] - R, 64), jnp.float32)
    # ^ zero pad rows: conv2's junk rows (h in {6,7}) of the last batch read
    #   them; they must stay finite and are cancelled by zero rows in w3x.

    # ---- Conv2: stage the 3 row-shifted slabs once, then ONE matmul --------
    # p2[b*8+h, di*64 + j*8 + cin] = a1[b, h+di, j, cin]   (junk for h >= 6)
    for di in range(3):
        p2_ref[:, di * 64:(di + 1) * 64] = a1_ref[di:di + R, :]
    a2_ref[...] = _elu(jnp.dot(p2_ref[...], w2x_ref[...],
                               preferred_element_type=jnp.float32)
                       + b2x_ref[...])                    # rows (b,h), lanes (w,c)

    # ---- Flatten: lane-dense (B, 384) slab, batch on sublanes --------------
    # flat[b, h*64 + w*8 + c] = a2[b, h, w, c]; lanes with w in {6,7} carry
    # finite junk that w3x's exactly-zero rows cancel (keep that invariant).
    for b in range(B):
        for h in range(6):
            flat_ref[b, h * 64:(h + 1) * 64] = a2_ref[b * 8 + h, :]

    # ---- Linear(288,128): ONE bf16 MXU matmul (no VPU broadcast loop) ------
    a3 = _elu(jnp.dot(flat_ref[...].astype(jnp.bfloat16), w3x_ref[...],
                      preferred_element_type=jnp.float32) + b3_ref[...])

    # ---- Linear(128,OUT): batched matmul + single store --------------------
    o_ref[...] = jnp.dot(a3, w4_ref[...],
                         preferred_element_type=jnp.float32) + b4_ref[...]


@jax.jit
def actor_forward(kparams, obs_input, masks=None):
    """Actor.forward(obs_input, masks); masks accepted and ignored (as in torch).

    obs_input: (B, 1, 10, 10) NCHW float32 -> (B, OUT) logits.
    Perf notes: the kernel is launch/DMA-latency bound (~150 KB of weights per
    call, <0.5 MFLOP of compute); amortize by batching many observations per
    call.  At B >= ~64 add a leading batch grid axis with
    dimension_semantics=("parallel",) so v7x's second TensorCore is fed; at
    B=2 grid-less is fastest (per-step overhead would dominate).
    """
    del masks
    B = obs_input.shape[0]
    out_size = kparams["w4"].shape[1]
    return pl.pallas_call(
        _actor_fused_kernel,
        out_shape=jax.ShapeDtypeStruct((B, out_size), jnp.float32),
        in_specs=[pl.BlockSpec(memory_space=pltpu.MemorySpace.VMEM)] * 9,
        out_specs=pl.BlockSpec(memory_space=pltpu.MemorySpace.VMEM),
        scratch_shapes=[
            pltpu.VMEM((B * 8, 30), jnp.float32),        # p1  (conv1 im2col)
            pltpu.VMEM((B * 8 + 8, 64), jnp.float32),    # a1  (+ zero pad rows)
            pltpu.VMEM((B * 8, 192), jnp.float32),       # p2  (conv2 im2col)
            pltpu.VMEM((B * 8, 64), jnp.float32),        # a2
            pltpu.VMEM((B, 384), jnp.float32),           # flat
        ],
    )(obs_input.astype(jnp.float32), kparams["w1x"], kparams["b1x"],
      kparams["w2x"], kparams["b2x"], kparams["w3x"], kparams["b3"],
      kparams["w4"], kparams["b4"])


def init_params(output_size, key):
    """Synthetic parameters in PyTorch-equivalent layouts:
      w1[(di*3+dj), cout]       <-> conv1.weight[cout, 0, di, dj]
      w2[(di*3+dj), cin, cout]  <-> conv2.weight[cout, cin, di, dj]
      w3[c*36+h*6+w, n]         <-> linear3.weight.T (NCHW-flatten row order)
      w4[k, n]                  <-> linear4.weight.T
    w3 is quantised to bf16-representable values so the kernel can ship it in
    bf16 while the f32 reference uses numerically identical weights.
    """
    ks = jax.random.split(key, 8)
    p = {}
    p["w1"] = 0.1 * jax.random.normal(ks[0], (9, 8), jnp.float32)
    p["b1"] = 0.1 * jax.random.normal(ks[1], (8,), jnp.float32)
    p["w2"] = 0.1 * jax.random.normal(ks[2], (9, 8, 8), jnp.float32)
    p["b2"] = 0.1 * jax.random.normal(ks[3], (8,), jnp.float32)
    w3 = 0.1 * jax.random.normal(ks[4], (288, 128), jnp.float32)
    p["w3"] = w3.astype(jnp.bfloat16).astype(jnp.float32)
    p["b3"] = 0.1 * jax.random.normal(ks[5], (128,), jnp.float32)
    p["w4"] = 0.1 * jax.random.normal(ks[6], (128, output_size), jnp.float32)
    p["b4"] = 0.1 * jax.random.normal(ks[7], (output_size,), jnp.float32)
    return p


def prepare_kernel_params(p):
    """One-time repack into kernel-ready layouts (hoisted out of the forward).

    Each conv weight is expanded into a dense matrix that folds the im2col
    column structure of the kernel's (row=(b,i), lane=(j,c)) layout, so every
    layer is a single MXU matmul:
      w1x[di*10 + j', j*8 + c]         = w1[di*3 + (j'-j), c]       if 0<=j'-j<=2
      w2x[di*64 + j*8 + ci, w*8 + co]  = w2[di*3 + (j-w), ci, co]   if 0<=j-w<=2
      w3x[h*64 + w*8 + c, n]           = w3[c*36 + h*6 + w, n]      (w<6, else 0)
    w3x also folds the torch NCHW Flatten permutation and ships in bf16 (it
    dominates per-call weight DMA).  Its exactly-zero rows at w in {6,7} are
    what cancel the junk lanes conv2 computes - keep that invariant.
    """
    out_size = p["w4"].shape[1]
    w1 = np.asarray(p["w1"], np.float32)           # (9, 8)    [tap, cout]
    w2 = np.asarray(p["w2"], np.float32)           # (9, 8, 8) [tap, cin, cout]
    w3 = np.asarray(p["w3"], np.float32)           # (288,128) rows c*36+h*6+w

    w1x = np.zeros((30, 64), np.float32)
    for di in range(3):
        for j in range(8):
            for dj in range(3):
                w1x[di * 10 + j + dj, j * 8:(j + 1) * 8] = w1[di * 3 + dj]

    w2x = np.zeros((192, 64), np.float32)
    for di in range(3):
        for j in range(8):
            for w in range(8):
                dj = j - w
                if 0 <= dj <= 2:
                    w2x[di * 64 + j * 8:di * 64 + (j + 1) * 8,
                        w * 8:(w + 1) * 8] = w2[di * 3 + dj]

    w3x = np.zeros((384, 128), np.float32)
    for h in range(6):
        for w in range(6):
            for c in range(8):
                w3x[h * 64 + w * 8 + c, :] = w3[c * 36 + h * 6 + w, :]

    return {
        "w1x": jnp.asarray(w1x),
        "b1x": jnp.asarray(np.tile(np.asarray(p["b1"], np.float32), 8)[None, :]),
        "w2x": jnp.asarray(w2x),
        "b2x": jnp.asarray(np.tile(np.asarray(p["b2"], np.float32), 8)[None, :]),
        "w3x": jnp.asarray(w3x).astype(jnp.bfloat16),
        "b3": jnp.asarray(p["b3"], jnp.float32).reshape(1, 128),
        "w4": jnp.asarray(p["w4"], jnp.float32),
        "b4": jnp.asarray(p["b4"], jnp.float32).reshape(1, out_size),
    }


def _im2col(x_nhwc, k=3):
    """(B, H, W, C) -> (B*Ho*Wo, k*k*C); rows ordered (b,i,j), cols (tap, c)."""
    B, H, W, C = x_nhwc.shape
    Ho, Wo = H - k + 1, W - k + 1
    patches = jnp.stack(
        [x_nhwc[:, i:i + Ho, j:j + Wo, :] for i in range(k) for j in range(k)],
        axis=3)
    return patches.reshape(B * Ho * Wo, k * k * C)


def actor_forward_ref(p, obs_input):
    """Pure-JAX reference with PyTorch semantics (NCHW flatten, expm1 ELU)."""
    def elu(v):
        return jnp.where(v > 0.0, v, jnp.expm1(v))
    B = obs_input.shape[0]
    x = jnp.transpose(obs_input, (0, 2, 3, 1))
    a1 = elu(_im2col(x, 3) @ p["w1"] + p["b1"]).reshape(B, 8, 8, 8)
    a2 = elu(_im2col(a1, 3) @ p["w2"].reshape(72, 8) + p["b2"]).reshape(B, 6, 6, 8)
    flat = jnp.transpose(a2, (0, 3, 1, 2)).reshape(B, 288)   # torch Flatten
    a3 = elu(flat @ p["w3"] + p["b3"])
    return a3 @ p["w4"] + p["b4"]


if __name__ == "__main__":
    key = jax.random.PRNGKey(0)
    k_obs, k_par = jax.random.split(key)

    batch, output_size = 2, 5
    # Linear(288, ...) after two valid 3x3 convs with 8 channels => 10x10 input.
    obs = jax.random.normal(k_obs, (batch, 1, 10, 10), jnp.float32)
    masks = jnp.ones((batch, output_size), jnp.float32)   # unused, as in torch
    params = init_params(output_size, k_par)
    kparams = prepare_kernel_params(params)

    logits = actor_forward(kparams, obs, masks)
    logits = jax.block_until_ready(logits)

    ref = actor_forward_ref(params, obs)
    assert logits.shape == (batch, output_size)
    assert bool(jnp.all(jnp.isfinite(logits)))
    # 1e-2 tolerance: the TPU MXU at default precision runs f32 matmuls as
    # bf16 passes and Linear(288,128) now takes bf16 operands on the MXU (per
    # the perf review); measured drift is ~1e-3 while any structural /
    # permutation bug would show up at > 1e-1.
    assert jnp.allclose(logits, ref, atol=1e-2, rtol=1e-2), (
        float(jnp.max(jnp.abs(logits - ref))))

    print("KERNEL_OK")
</pallas_src>

<mosaic_0001>
module attributes {stable_mosaic.version = 11 : i64} {
  func.func @_actor_fused_kernel(%arg0: memref<2x1x10x10xf32, #tpu.memory_space<vmem>>, %arg1: memref<30x64xf32, #tpu.memory_space<vmem>>, %arg2: memref<1x64xf32, #tpu.memory_space<vmem>>, %arg3: memref<192x64xf32, #tpu.memory_space<vmem>>, %arg4: memref<1x64xf32, #tpu.memory_space<vmem>>, %arg5: memref<384x128xbf16, #tpu.memory_space<vmem>>, %arg6: memref<1x128xf32, #tpu.memory_space<vmem>>, %arg7: memref<128x5xf32, #tpu.memory_space<vmem>>, %arg8: memref<1x5xf32, #tpu.memory_space<vmem>>, %arg9: memref<2x5xf32, #tpu.memory_space<vmem>>, %arg10: memref<16x30xf32, #tpu.memory_space<vmem>>, %arg11: memref<24x64xf32, #tpu.memory_space<vmem>>, %arg12: memref<16x192xf32, #tpu.memory_space<vmem>>, %arg13: memref<16x64xf32, #tpu.memory_space<vmem>>, %arg14: memref<2x384xf32, #tpu.memory_space<vmem>>) attributes {dimension_semantics = [], scalar_prefetch = 0 : i64, scratch_operands = 5 : i64, tpu.core_type = #tpu.core_type<tc>} {
    %c0 = arith.constant 0 : index
    %c0_0 = arith.constant 0 : index
    %c0_1 = arith.constant 0 : index
    %c0_2 = arith.constant 0 : index
    %0 = vector.load %arg0[%c0, %c0_0, %c0_1, %c0_2] : memref<2x1x10x10xf32, #tpu.memory_space<vmem>>, vector<1x1x8x10xf32>
    %1 = vector.shape_cast %0 : vector<1x1x8x10xf32> to vector<8x10xf32>
    %c0_3 = arith.constant 0 : index
    %c0_4 = arith.constant 0 : index
    %2 = vector.load %arg10[%c0_3, %c0_4] : memref<16x30xf32, #tpu.memory_space<vmem>>, vector<8x10xf32>
    tpu.vector_store %arg10[%c0_3, %c0_4], %1 {strides = array<i32>} : memref<16x30xf32, #tpu.memory_space<vmem>>, vector<8x10xf32>,
    %c0_5 = arith.constant 0 : index
    %c0_6 = arith.constant 0 : index
    %c1 = arith.constant 1 : index
    %c0_7 = arith.constant 0 : index
    %3 = vector.load %arg0[%c0_5, %c0_6, %c1, %c0_7] : memref<2x1x10x10xf32, #tpu.memory_space<vmem>>, vector<1x1x8x10xf32>
    %4 = vector.shape_cast %3 : vector<1x1x8x10xf32> to vector<8x10xf32>
    %c0_8 = arith.constant 0 : index
    %c10 = arith.constant 10 : index
    %5 = vector.load %arg10[%c0_8, %c10] : memref<16x30xf32, #tpu.memory_space<vmem>>, vector<8x10xf32>
    tpu.vector_store %arg10[%c0_8, %c10], %4 {strides = array<i32>} : memref<16x30xf32, #tpu.memory_space<vmem>>, vector<8x10xf32>,
    %c0_9 = arith.constant 0 : index
    %c0_10 = arith.constant 0 : index
    %c2 = arith.constant 2 : index
    %c0_11 = arith.constant 0 : index
    %6 = vector.load %arg0[%c0_9, %c0_10, %c2, %c0_11] : memref<2x1x10x10xf32, #tpu.memory_space<vmem>>, vector<1x1x8x10xf32>
    %7 = vector.shape_cast %6 : vector<1x1x8x10xf32> to vector<8x10xf32>
    %c0_12 = arith.constant 0 : index
    %c20 = arith.constant 20 : index
    %8 = vector.load %arg10[%c0_12, %c20] : memref<16x30xf32, #tpu.memory_space<vmem>>, vector<8x10xf32>
    tpu.vector_store %arg10[%c0_12, %c20], %7 {strides = array<i32>} : memref<16x30xf32, #tpu.memory_space<vmem>>, vector<8x10xf32>,
    %c1_13 = arith.constant 1 : index
    %c0_14 = arith.constant 0 : index
    %c0_15 = arith.constant 0 : index
    %c0_16 = arith.constant 0 : index
    %9 = vector.load %arg0[%c1_13, %c0_14, %c0_15, %c0_16] : memref<2x1x10x10xf32, #tpu.memory_space<vmem>>, vector<1x1x8x10xf32>
    %10 = vector.shape_cast %9 : vector<1x1x8x10xf32> to vector<8x10xf32>
    %c8 = arith.constant 8 : index
    %c0_17 = arith.constant 0 : index
    %11 = vector.load %arg10[%c8, %c0_17] : memref<16x30xf32, #tpu.memory_space<vmem>>, vector<8x10xf32>
    tpu.vector_store %arg10[%c8, %c0_17], %10 {strides = array<i32>} : memref<16x30xf32, #tpu.memory_space<vmem>>, vector<8x10xf32>,
    %c1_18 = arith.constant 1 : index
    %c0_19 = arith.constant 0 : index
    %c1_20 = arith.constant 1 : index
    %c0_21 = arith.constant 0 : index
    %12 = vector.load %arg0[%c1_18, %c0_19, %c1_20, %c0_21] : memref<2x1x10x10xf32, #tpu.memory_space<vmem>>, vector<1x1x8x10xf32>
    %13 = vector.shape_cast %12 : vector<1x1x8x10xf32> to vector<8x10xf32>
    %c8_22 = arith.constant 8 : index
    %c10_23 = arith.constant 10 : index
    %14 = vector.load %arg10[%c8_22, %c10_23] : memref<16x30xf32, #tpu.memory_space<vmem>>, vector<8x10xf32>
    tpu.vector_store %arg10[%c8_22, %c10_23], %13 {strides = array<i32>} : memref<16x30xf32, #tpu.memory_space<vmem>>, vector<8x10xf32>,
    %c1_24 = arith.constant 1 : index
    %c0_25 = arith.constant 0 : index
    %c2_26 = arith.constant 2 : index
    %c0_27 = arith.constant 0 : index
    %15 = vector.load %arg0[%c1_24, %c0_25, %c2_26, %c0_27] : memref<2x1x10x10xf32, #tpu.memory_space<vmem>>, vector<1x1x8x10xf32>
    %16 = vector.shape_cast %15 : vector<1x1x8x10xf32> to vector<8x10xf32>
    %c8_28 = arith.constant 8 : index
    %c20_29 = arith.constant 20 : index
    %17 = vector.load %arg10[%c8_28, %c20_29] : memref<16x30xf32, #tpu.memory_space<vmem>>, vector<8x10xf32>
    tpu.vector_store %arg10[%c8_28, %c20_29], %16 {strides = array<i32>} : memref<16x30xf32, #tpu.memory_space<vmem>>, vector<8x10xf32>,
    %c0_30 = arith.constant 0 : index
    %c0_31 = arith.constant 0 : index
    %18 = vector.load %arg10[%c0_30, %c0_31] : memref<16x30xf32, #tpu.memory_space<vmem>>, vector<16x30xf32>
    %c0_32 = arith.constant 0 : index
    %c0_33 = arith.constant 0 : index
    %19 = vector.load %arg1[%c0_32, %c0_33] : memref<30x64xf32, #tpu.memory_space<vmem>>, vector<30x64xf32>
    %cst = arith.constant dense<0.000000e+00> : vector<16x64xf32>
    %20 = tpu.matmul %18, %19, %cst {dimension_numbers = #tpu.dot_dimension_numbers<[1], [0], [0], [1], [0, 0, 1, 1], [], []>} : vector<16x30xf32>, vector<30x64xf32>, vector<16x64xf32> -> vector<16x64xf32>
    %c0_34 = arith.constant 0 : index
    %c0_35 = arith.constant 0 : index
    %21 = vector.load %arg2[%c0_34, %c0_35] : memref<1x64xf32, #tpu.memory_space<vmem>>, vector<1x64xf32>
    %22 = vector.broadcast %21 : vector<1x64xf32> to vector<16x64xf32>
    %23 = arith.addf %20, %22 : vector<16x64xf32>
    %cst_36 = arith.constant 0.000000e+00 : f32
    %24 = vector.broadcast %cst_36 : f32 to vector<16x64xf32>
    %25 = arith.cmpf ogt, %23, %24 : vector<16x64xf32>
    %cst_37 = arith.constant 0.000000e+00 : f32
    %26 = vector.broadcast %cst_37 : f32 to vector<16x64xf32>
    %27 = arith.minimumf %23, %26 : vector<16x64xf32>
    %28 = math.exp %27 : vector<16x64xf32>
    %cst_38 = arith.constant 1.000000e+00 : f32
    %29 = vector.broadcast %cst_38 : f32 to vector<16x64xf32>
    %30 = arith.subf %28, %29 : vector<16x64xf32>
    %31 = arith.select %25, %23, %30 : vector<16x64xi1>, vector<16x64xf32>
    %c0_39 = arith.constant 0 : index
    %c0_40 = arith.constant 0 : index
    %32 = vector.load %arg11[%c0_39, %c0_40] : memref<24x64xf32, #tpu.memory_space<vmem>>, vector<16x64xf32>
    tpu.vector_store %arg11[%c0_39, %c0_40], %31 {strides = array<i32>} : memref<24x64xf32, #tpu.memory_space<vmem>>, vector<16x64xf32>,
    %cst_41 = arith.constant 0.000000e+00 : f32
    %33 = vector.broadcast %cst_41 : f32 to vector<8x64xf32>
    %c16 = arith.constant 16 : index
    %c0_42 = arith.constant 0 : index
    %34 = vector.load %arg11[%c16, %c0_42] : memref<24x64xf32, #tpu.memory_space<vmem>>, vector<8x64xf32>
    tpu.vector_store %arg11[%c16, %c0_42], %33 {strides = array<i32>} : memref<24x64xf32, #tpu.memory_space<vmem>>, vector<8x64xf32>,
    %c0_43 = arith.constant 0 : index
    %c0_44 = arith.constant 0 : index
    %35 = vector.load %arg11[%c0_43, %c0_44] : memref<24x64xf32, #tpu.memory_space<vmem>>, vector<16x64xf32>
    %c0_45 = arith.constant 0 : index
    %c0_46 = arith.constant 0 : index
    %36 = vector.load %arg12[%c0_45, %c0_46] : memref<16x192xf32, #tpu.memory_space<vmem>>, vector<16x64xf32>
    tpu.vector_store %arg12[%c0_45, %c0_46], %35 {strides = array<i32>} : memref<16x192xf32, #tpu.memory_space<vmem>>, vector<16x64xf32>,
    %c1_47 = arith.constant 1 : index
    %c0_48 = arith.constant 0 : index
    %37 = vector.load %arg11[%c1_47, %c0_48] : memref<24x64xf32, #tpu.memory_space<vmem>>, vector<16x64xf32>
    %c0_49 = arith.constant 0 : index
    %c64 = arith.constant 64 : index
    %38 = vector.load %arg12[%c0_49, %c64] : memref<16x192xf32, #tpu.memory_space<vmem>>, vector<16x64xf32>
    tpu.vector_store %arg12[%c0_49, %c64], %37 {strides = array<i32>} : memref<16x192xf32, #tpu.memory_space<vmem>>, vector<16x64xf32>,
    %c2_50 = arith.constant 2 : index
    %c0_51 = arith.constant 0 : index
    %39 = vector.load %arg11[%c2_50, %c0_51] : memref<24x64xf32, #tpu.memory_space<vmem>>, vector<16x64xf32>
    %c0_52 = arith.constant 0 : index
    %c128 = arith.constant 128 : index
    %40 = vector.load %arg12[%c0_52, %c128] : memref<16x192xf32, #tpu.memory_space<vmem>>, vector<16x64xf32>
    tpu.vector_store %arg12[%c0_52, %c128], %39 {strides = array<i32>} : memref<16x192xf32, #tpu.memory_space<vmem>>, vector<16x64xf32>,
    %c0_53 = arith.constant 0 : index
    %c0_54 = arith.constant 0 : index
    %41 = vector.load %arg12[%c0_53, %c0_54] : memref<16x192xf32, #tpu.memory_space<vmem>>, vector<16x192xf32>
    %c0_55 = arith.constant 0 : index
    %c0_56 = arith.constant 0 : index
    %42 = vector.load %arg3[%c0_55, %c0_56] : memref<192x64xf32, #tpu.memory_space<vmem>>, vector<192x64xf32>
    %cst_57 = arith.constant dense<0.000000e+00> : vector<16x64xf32>
    %43 = tpu.matmul %41, %42, %cst_57 {dimension_numbers = #tpu.dot_dimension_numbers<[1], [0], [0], [1], [0, 0, 1, 1], [], []>} : vector<16x192xf32>, vector<192x64xf32>, vector<16x64xf32> -> vector<16x64xf32>
    %c0_58 = arith.constant 0 : index
    %c0_59 = arith.constant 0 : index
    %44 = vector.load %arg4[%c0_58, %c0_59] : memref<1x64xf32, #tpu.memory_space<vmem>>, vector<1x64xf32>
    %45 = vector.broadcast %44 : vector<1x64xf32> to vector<16x64xf32>
    %46 = arith.addf %43, %45 : vector<16x64xf32>
    %cst_60 = arith.constant 0.000000e+00 : f32
    %47 = vector.broadcast %cst_60 : f32 to vector<16x64xf32>
    %48 = arith.cmpf ogt, %46, %47 : vector<16x64xf32>
    %cst_61 = arith.constant 0.000000e+00 : f32
    %49 = vector.broadcast %cst_61 : f32 to vector<16x64xf32>
    %50 = arith.minimumf %46, %49 : vector<16x64xf32>
    %51 = math.exp %50 : vector<16x64xf32>
    %cst_62 = arith.constant 1.000000e+00 : f32
    %52 = vector.broadcast %cst_62 : f32 to vector<16x64xf32>
    %53 = arith.subf %51, %52 : vector<16x64xf32>
    %54 = arith.select %48, %46, %53 : vector<16x64xi1>, vector<16x64xf32>
    %c0_63 = arith.constant 0 : index
    %c0_64 = arith.constant 0 : index
    %55 = vector.load %arg13[%c0_63, %c0_64] : memref<16x64xf32, #tpu.memory_space<vmem>>, vector<16x64xf32>
    tpu.vector_store %arg13[%c0_63, %c0_64], %54 {strides = array<i32>} : memref<16x64xf32, #tpu.memory_space<vmem>>, vector<16x64xf32>,
    %c0_65 = arith.constant 0 : index
    %c0_66 = arith.constant 0 : index
    %56 = vector.load %arg13[%c0_65, %c0_66] : memref<16x64xf32, #tpu.memory_space<vmem>>, vector<1x64xf32>
    %57 = vector.shape_cast %56 : vector<1x64xf32> to vector<64xf32>
    %c0_67 = arith.constant 0 : index
    %c0_68 = arith.constant 0 : index
    %58 = vector.load %arg14[%c0_67, %c0_68] : memref<2x384xf32, #tpu.memory_space<vmem>>, vector<1x64xf32>
    %59 = vector.shape_cast %58 : vector<1x64xf32> to vector<64xf32>
    %60 = vector.shape_cast %57 : vector<64xf32> to vector<1x64xf32>
    tpu.vector_store %arg14[%c0_67, %c0_68], %60 {strides = array<i32>} : memref<2x384xf32, #tpu.memory_space<vmem>>, vector<1x64xf32>,
    %c1_69 = arith.constant 1 : index
    %c0_70 = arith.constant 0 : index
    %61 = vector.load %arg13[%c1_69, %c0_70] : memref<16x64xf32, #tpu.memory_space<vmem>>, vector<1x64xf32>
    %62 = vector.shape_cast %61 : vector<1x64xf32> to vector<64xf32>
    %c0_71 = arith.constant 0 : index
    %c64_72 = arith.constant 64 : index
    %63 = vector.load %arg14[%c0_71, %c64_72] : memref<2x384xf32, #tpu.memory_space<vmem>>, vector<1x64xf32>
    %64 = vector.shape_cast %63 : vector<1x64xf32> to vector<64xf32>
    %65 = vector.shape_cast %62 : vector<64xf32> to vector<1x64xf32>
    tpu.vector_store %arg14[%c0_71, %c64_72], %65 {strides = array<i32>} : memref<2x384xf32, #tpu.memory_space<vmem>>, vector<1x64xf32>,
    %c2_73 = arith.constant 2 : index
    %c0_74 = arith.constant 0 : index
    %66 = vector.load %arg13[%c2_73, %c0_74] : memref<16x64xf32, #tpu.memory_space<vmem>>, vector<1x64xf32>
    %67 = vector.shape_cast %66 : vector<1x64xf32> to vector<64xf32>
    %c0_75 = arith.constant 0 : index
    %c128_76 = arith.constant 128 : index
    %68 = vector.load %arg14[%c0_75, %c128_76] : memref<2x384xf32, #tpu.memory_space<vmem>>, vector<1x64xf32>
    %69 = vector.shape_cast %68 : vector<1x64xf32> to vector<64xf32>
    %70 = vector.shape_cast %67 : vector<64xf32> to vector<1x64xf32>
    tpu.vector_store %arg14[%c0_75, %c128_76], %70 {strides = array<i32>} : memref<2x384xf32, #tpu.memory_space<vmem>>, vector<1x64xf32>,
    %c3 = arith.constant 3 : index
    %c0_77 = arith.constant 0 : index
    %71 = vector.load %arg13[%c3, %c0_77] : memref<16x64xf32, #tpu.memory_space<vmem>>, vector<1x64xf32>
    %72 = vector.shape_cast %71 : vector<1x64xf32> to vector<64xf32>
    %c0_78 = arith.constant 0 : index
    %c192 = arith.constant 192 : index
    %73 = vector.load %arg14[%c0_78, %c192] : memref<2x384xf32, #tpu.memory_space<vmem>>, vector<1x64xf32>
    %74 = vector.shape_cast %73 : vector<1x64xf32> to vector<64xf32>
    %75 = vector.shape_cast %72 : vector<64xf32> to vector<1x64xf32>
    tpu.vector_store %arg14[%c0_78, %c192], %75 {strides = array<i32>} : memref<2x384xf32, #tpu.memory_space<vmem>>, vector<1x64xf32>,
    %c4 = arith.constant 4 : index
    %c0_79 = arith.constant 0 : index
    %76 = vector.load %arg13[%c4, %c0_79] : memref<16x64xf32, #tpu.memory_space<vmem>>, vector<1x64xf32>
    %77 = vector.shape_cast %76 : vector<1x64xf32> to vector<64xf32>
    %c0_80 = arith.constant 0 : index
    %c256 = arith.constant 256 : index
    %78 = vector.load %arg14[%c0_80, %c256] : memref<2x384xf32, #tpu.memory_space<vmem>>, vector<1x64xf32>
    %79 = vector.shape_cast %78 : vector<1x64xf32> to vector<64xf32>
    %80 = vector.shape_cast %77 : vector<64xf32> to vector<1x64xf32>
    tpu.vector_store %arg14[%c0_80, %c256], %80 {strides = array<i32>} : memref<2x384xf32, #tpu.memory_space<vmem>>, vector<1x64xf32>,
    %c5 = arith.constant 5 : index
    %c0_81 = arith.constant 0 : index
    %81 = vector.load %arg13[%c5, %c0_81] : memref<16x64xf32, #tpu.memory_space<vmem>>, vector<1x64xf32>
    %82 = vector.shape_cast %81 : vector<1x64xf32> to vector<64xf32>
    %c0_82 = arith.constant 0 : index
    %c320 = arith.constant 320 : index
    %83 = vector.load %arg14[%c0_82, %c320] : memref<2x384xf32, #tpu.memory_space<vmem>>, vector<1x64xf32>
    %84 = vector.shape_cast %83 : vector<1x64xf32> to vector<64xf32>
    %85 = vector.shape_cast %82 : vector<64xf32> to vector<1x64xf32>
    tpu.vector_store %arg14[%c0_82, %c320], %85 {strides = array<i32>} : memref<2x384xf32, #tpu.memory_space<vmem>>, vector<1x64xf32>,
    %c8_83 = arith.constant 8 : index
    %c0_84 = arith.constant 0 : index
    %86 = vector.load %arg13[%c8_83, %c0_84] : memref<16x64xf32, #tpu.memory_space<vmem>>, vector<1x64xf32>
    %87 = vector.shape_cast %86 : vector<1x64xf32> to vector<64xf32>
    %c1_85 = arith.constant 1 : index
    %c0_86 = arith.constant 0 : index
    %88 = vector.load %arg14[%c1_85, %c0_86] : memref<2x384xf32, #tpu.memory_space<vmem>>, vector<1x64xf32>
    %89 = vector.shape_cast %88 : vector<1x64xf32> to vector<64xf32>
    %90 = vector.shape_cast %87 : vector<64xf32> to vector<1x64xf32>
    tpu.vector_store %arg14[%c1_85, %c0_86], %90 {strides = array<i32>} : memref<2x384xf32, #tpu.memory_space<vmem>>, vector<1x64xf32>,
    %c9 = arith.constant 9 : index
    %c0_87 = arith.constant 0 : index
    %91 = vector.load %arg13[%c9, %c0_87] : memref<16x64xf32, #tpu.memory_space<vmem>>, vector<1x64xf32>
    %92 = vector.shape_cast %91 : vector<1x64xf32> to vector<64xf32>
    %c1_88 = arith.constant 1 : index
    %c64_89 = arith.constant 64 : index
    %93 = vector.load %arg14[%c1_88, %c64_89] : memref<2x384xf32, #tpu.memory_space<vmem>>, vector<1x64xf32>
    %94 = vector.shape_cast %93 : vector<1x64xf32> to vector<64xf32>
    %95 = vector.shape_cast %92 : vector<64xf32> to vector<1x64xf32>
    tpu.vector_store %arg14[%c1_88, %c64_89], %95 {strides = array<i32>} : memref<2x384xf32, #tpu.memory_space<vmem>>, vector<1x64xf32>,
    %c10_90 = arith.constant 10 : index
    %c0_91 = arith.constant 0 : index
    %96 = vector.load %arg13[%c10_90, %c0_91] : memref<16x64xf32, #tpu.memory_space<vmem>>, vector<1x64xf32>
    %97 = vector.shape_cast %96 : vector<1x64xf32> to vector<64xf32>
    %c1_92 = arith.constant 1 : index
    %c128_93 = arith.constant 128 : index
    %98 = vector.load %arg14[%c1_92, %c128_93] : memref<2x384xf32, #tpu.memory_space<vmem>>, vector<1x64xf32>
    %99 = vector.shape_cast %98 : vector<1x64xf32> to vector<64xf32>
    %100 = vector.shape_cast %97 : vector<64xf32> to vector<1x64xf32>
    tpu.vector_store %arg14[%c1_92, %c128_93], %100 {strides = array<i32>} : memref<2x384xf32, #tpu.memory_space<vmem>>, vector<1x64xf32>,
    %c11 = arith.constant 11 : index
    %c0_94 = arith.constant 0 : index
    %101 = vector.load %arg13[%c11, %c0_94] : memref<16x64xf32, #tpu.memory_space<vmem>>, vector<1x64xf32>
    %102 = vector.shape_cast %101 : vector<1x64xf32> to vector<64xf32>
    %c1_95 = arith.constant 1 : index
    %c192_96 = arith.constant 192 : index
    %103 = vector.load %arg14[%c1_95, %c192_96] : memref<2x384xf32, #tpu.memory_space<vmem>>, vector<1x64xf32>
    %104 = vector.shape_cast %103 : vector<1x64xf32> to vector<64xf32>
    %105 = vector.shape_cast %102 : vector<64xf32> to vector<1x64xf32>
    tpu.vector_store %arg14[%c1_95, %c192_96], %105 {strides = array<i32>} : memref<2x384xf32, #tpu.memory_space<vmem>>, vector<1x64xf32>,
    %c12 = arith.constant 12 : index
    %c0_97 = arith.constant 0 : index
    %106 = vector.load %arg13[%c12, %c0_97] : memref<16x64xf32, #tpu.memory_space<vmem>>, vector<1x64xf32>
    %107 = vector.shape_cast %106 : vector<1x64xf32> to vector<64xf32>
    %c1_98 = arith.constant 1 : index
    %c256_99 = arith.constant 256 : index
    %108 = vector.load %arg14[%c1_98, %c256_99] : memref<2x384xf32, #tpu.memory_space<vmem>>, vector<1x64xf32>
    %109 = vector.shape_cast %108 : vector<1x64xf32> to vector<64xf32>
    %110 = vector.shape_cast %107 : vector<64xf32> to vector<1x64xf32>
    tpu.vector_store %arg14[%c1_98, %c256_99], %110 {strides = array<i32>} : memref<2x384xf32, #tpu.memory_space<vmem>>, vector<1x64xf32>,
    %c13 = arith.constant 13 : index
    %c0_100 = arith.constant 0 : index
    %111 = vector.load %arg13[%c13, %c0_100] : memref<16x64xf32, #tpu.memory_space<vmem>>, vector<1x64xf32>
    %112 = vector.shape_cast %111 : vector<1x64xf32> to vector<64xf32>
    %c1_101 = arith.constant 1 : index
    %c320_102 = arith.constant 320 : index
    %113 = vector.load %arg14[%c1_101, %c320_102] : memref<2x384xf32, #tpu.memory_space<vmem>>, vector<1x64xf32>
    %114 = vector.shape_cast %113 : vector<1x64xf32> to vector<64xf32>
    %115 = vector.shape_cast %112 : vector<64xf32> to vector<1x64xf32>
    tpu.vector_store %arg14[%c1_101, %c320_102], %115 {strides = array<i32>} : memref<2x384xf32, #tpu.memory_space<vmem>>, vector<1x64xf32>,
    %c0_103 = arith.constant 0 : index
    %c0_104 = arith.constant 0 : index
    %116 = vector.load %arg14[%c0_103, %c0_104] : memref<2x384xf32, #tpu.memory_space<vmem>>, vector<2x384xf32>
    %117 = arith.truncf %116 : vector<2x384xf32> to vector<2x384xbf16>
    %c0_105 = arith.constant 0 : index
    %c0_106 = arith.constant 0 : index
    %118 = vector.load %arg5[%c0_105, %c0_106] : memref<384x128xbf16, #tpu.memory_space<vmem>>, vector<384x128xbf16>
    %cst_107 = arith.constant dense<0.000000e+00> : vector<2x128xf32>
    %119 = tpu.matmul %117, %118, %cst_107 {dimension_numbers = #tpu.dot_dimension_numbers<[1], [0], [0], [1], [0, 0, 1, 1], [], []>} : vector<2x384xbf16>, vector<384x128xbf16>, vector<2x128xf32> -> vector<2x128xf32>
    %c0_108 = arith.constant 0 : index
    %c0_109 = arith.constant 0 : index
    %120 = vector.load %arg6[%c0_108, %c0_109] : memref<1x128xf32, #tpu.memory_space<vmem>>, vector<1x128xf32>
    %121 = vector.broadcast %120 : vector<1x128xf32> to vector<2x128xf32>
    %122 = arith.addf %119, %121 : vector<2x128xf32>
    %cst_110 = arith.constant 0.000000e+00 : f32
    %123 = vector.broadcast %cst_110 : f32 to vector<2x128xf32>
    %124 = arith.cmpf ogt, %122, %123 : vector<2x128xf32>
    %cst_111 = arith.constant 0.000000e+00 : f32
    %125 = vector.broadcast %cst_111 : f32 to vector<2x128xf32>
    %126 = arith.minimumf %122, %125 : vector<2x128xf32>
    %127 = math.exp %126 : vector<2x128xf32>
    %cst_112 = arith.constant 1.000000e+00 : f32
    %128 = vector.broadcast %cst_112 : f32 to vector<2x128xf32>
    %129 = arith.subf %127, %128 : vector<2x128xf32>
    %130 = arith.select %124, %122, %129 : vector<2x128xi1>, vector<2x128xf32>
    %c0_113 = arith.constant 0 : index
    %c0_114 = arith.constant 0 : index
    %131 = vector.load %arg7[%c0_113, %c0_114] : memref<128x5xf32, #tpu.memory_space<vmem>>, vector<128x5xf32>
    %cst_115 = arith.constant dense<0.000000e+00> : vector<2x5xf32>
    %132 = tpu.matmul %130, %131, %cst_115 {dimension_numbers = #tpu.dot_dimension_numbers<[1], [0], [0], [1], [0, 0, 1, 1], [], []>} : vector<2x128xf32>, vector<128x5xf32>, vector<2x5xf32> -> vector<2x5xf32>
    %c0_116 = arith.constant 0 : index
    %c0_117 = arith.constant 0 : index
    %133 = vector.load %arg8[%c0_116, %c0_117] : memref<1x5xf32, #tpu.memory_space<vmem>>, vector<1x5xf32>
    %134 = vector.broadcast %133 : vector<1x5xf32> to vector<2x5xf32>
    %135 = arith.addf %132, %134 : vector<2x5xf32>
    %c0_118 = arith.constant 0 : index
    %c0_119 = arith.constant 0 : index
    %136 = vector.load %arg9[%c0_118, %c0_119] : memref<2x5xf32, #tpu.memory_space<vmem>>, vector<2x5xf32>
    tpu.vector_store %arg9[%c0_118, %c0_119], %135 {strides = array<i32>} : memref<2x5xf32, #tpu.memory_space<vmem>>, vector<2x5xf32>,
    return
  }
}

</mosaic_0001>

<bundles_post_ra>
// kernel: actor_forward.1
= control target key start
LH: loop header
LB: loop body
LE: loop exit
PB: predicated region body
PF: predicated region fallthrough
CT: control target
= control target key end

     0   :  { %s1147_s15 = smov 10   ;;  %vm35_vm0 = vcmask 80896   ;;  %vm86_vm1 = vcmask 1045504   ;;  %vm1149_vm2 = vmmov 1   ;;  %s1510_s0 = inlined_call_operand.vmem [shape: f32[2,1,10,10], index: 0, kind: input, shape index: {}]   ;;  %s1511_s1 = inlined_call_operand.vmem [shape: f32[30,64], index: 1, kind: input, shape index: {}]   ;;  %s1512_s2 = inlined_call_operand.vmem [shape: f32[1,64], index: 2, kind: input, shape index: {}]   ;;  %s1513_s3 = inlined_call_operand.vmem [shape: f32[192,64], index: 3, kind: input, shape index: {}]   ;;  %s1514_s4 = inlined_call_operand.vmem [shape: f32[1,64], index: 4, kind: input, shape index: {}]   ;;  %s1515_s5 = inlined_call_operand.vmem [shape: bf16[384,128], index: 5, kind: input, shape index: {}]   ;;  %s1516_s6 = inlined_call_operand.vmem [shape: f32[1,128], index: 6, kind: input, shape index: {}]   ;;  %s1517_s7 = inlined_call_operand.vmem [shape: f32[128,5], index: 7, kind: input, shape index: {}]   ;;  %s1518_s8 = inlined_call_operand.vmem [shape: f32[1,5], index: 8, kind: input, shape index: {}]   ;;  %s1519_s9 = inlined_call_operand.hbm [shape: f32[2,5], index: 9, kind: output, shape index: {}]  }
   0x1   :  { %v37_v0 = vld [vmem:[%s1510_s0 + $0x1] sm:$0xff]  ;;  %v843_v1 = vld [vmem:[%s1510_s0 + $0x11] sm:$0xff]  ;;  %vm1014_vm3 = vmpackc.low %vm86_vm1, %vm1149_vm2 }
   0x2   :  { %v44_v2 = vld [vmem:[%s1510_s0 + $0x2] sm:$0xff]  ;;  %39 = vrot.lane.b32.xlu0 %v37_v0, %s1147_s15  ;;  %56 = vrot.lane.b32.xlu1 %v843_v1, %s1147_s15  ;;  %v844_v3 = vld [vmem:[%s1510_s0 + $0x12] sm:$0xff] }
   0x3   :  { %v34_v4 = vld [vmem:[%s1510_s0] sm:$0xff]  ;;  %v842_v5 = vld [vmem:[%s1510_s0 + $0x10] sm:$0xff]  ;;  %v69_v7 = vld [vmem:[%s1511_s1 + $0x8] sm:$0xff]  ;;  %s1148_s0 = smov 20  }
   0x4   :  { %36 = vst.msk [vmem:[#allocation2] sm:$0xff] %vm35_vm0, %v34_v4  ;;  %v68_v6 = vld [vmem:[%s1511_s1] sm:$0xff]  ;;  %53 = vst.msk [vmem:[#allocation2 + $0x8] sm:$0xff] %vm35_vm0, %v842_v5  ;;  %v70_v9 = vld [vmem:[%s1511_s1 + $0x10] sm:$0xff] }
   0x5   :  { %v1009_v8 = vpack.c.bf16 %v69_v7, %v68_v6  ;;  %v71_v10 = vld [vmem:[%s1511_s1 + $0x18] sm:$0x3f] }
   0x6   :  { %v1013_v11 = vpack.c.bf16 %v71_v10, %v70_v9  ;;  %46 = vrot.lane.b32.xlu0 %v44_v2, %s1148_s0  ;;  %62 = vrot.lane.b32.xlu1 %v844_v3, %s1148_s0 }
   0x7   :  { %1010 = vmatprep.subr.bf16.mxu0 %v1009_v8 }
   0x8   :  { %1012 = vmatpush3.bf16.msra.mxu0 %v1009_v8 }
   0x9   :  { %1015 = vmatprep.subr.msk.bf16.mxu0 %vm1014_vm3, %v1013_v11 }
   0xc   :  { %1018 = vmatpush3.bf16.msk.msra.mxu0 %vm1014_vm3, %v1013_v11 }
   0xd   :  { %14 = vsyncpa [#allocation8], 0  ;;  %vm42_vm4 = vcmask 162896   ;;  %vm49_vm5 = vcmask 244896   ;;  %vm79_vm6 = vcmask 244736   ;;  %vm177_vm7 = vcmask 523264  }
   0xe   :  { %v1150_v18 = vmov 0.0   ;;  %v206_v19 = vld [vmem:[%s1513_s3] sm:$0xff]  ;;  %v207_v20 = vld [vmem:[%s1513_s3 + $0x8] sm:$0xff]  ;;  %v208_v21 = vld [vmem:[%s1513_s3 + $0x10] sm:$0xff]  ;;  %v1151_v22 = vmov 0.0|0.0   ;;  %vm195_vm10 = vcmask 1048064  }
   0xf   :  { %180 = vst.msk [vmem:[#allocation3 + $0x10] sm:$0xff] %vm177_vm7, %v1150_v18  ;;  %1019 = vmatprep.subr.bf16.mxu1 %v1151_v22  ;;  %v1020_v23 = vpack.c.bf16 %v207_v20, %v206_v19  ;;  %v209_v24 = vld [vmem:[%s1513_s3 + $0x18] sm:$0xff]  ;;  %v210_v26 = vld [vmem:[%s1513_s3 + $0x20] sm:$0xff]  ;;  %v211_v27 = vld [vmem:[%s1513_s3 + $0x28] sm:$0xff]  ;;  %vm333_vm13 = vcmask 516096   ;;  %vm1153_vm14 = vmmov 0  }
  0x10   :  { %v1023_v25 = vpack.c.bf16 %v209_v24, %v208_v21  ;;  %v1026_v28 = vpack.c.bf16 %v211_v27, %v210_v26  ;;  %v212_v29 = vld [vmem:[%s1513_s3 + $0x30] sm:$0xff]  ;;  %v213_v30 = vld [vmem:[%s1513_s3 + $0x38] sm:$0xff]  ;;  %v214_v32 = vld [vmem:[%s1513_s3 + $0x40] sm:$0xff]  ;;  %vm347_vm15 = vcmask 1040896   ;;  %s1155_s17 = smov [#allocation7]   ;;  %vm826_vm1 = vcmask 33792  }
  0x11   :  { %1021 = vmatpush1.bf16.msra.mxu1 %v1020_v23  ;;  %v1029_v31 = vpack.c.bf16 %v213_v30, %v212_v29  ;;  %v215_v33 = vld [vmem:[%s1513_s3 + $0x48] sm:$0xff]  ;;  %v216_v35 = vld [vmem:[%s1513_s3 + $0x50] sm:$0xff]  ;;  %v217_v36 = vld [vmem:[%s1513_s3 + $0x58] sm:$0xff] }
  0x12   :  { %1022 = vmatprep.subr.bf16.mxu1 %v1151_v22  ;;  %v1032_v34 = vpack.c.bf16 %v215_v33, %v214_v32  ;;  %v1035_v37 = vpack.c.bf16 %v217_v36, %v216_v35  ;;  %v218_v38 = vld [vmem:[%s1513_s3 + $0x60] sm:$0xff]  ;;  %v219_v39 = vld [vmem:[%s1513_s3 + $0x68] sm:$0xff]  ;;  %v220_v41 = vld [vmem:[%s1513_s3 + $0x70] sm:$0xff] }
  0x13   :  { %v1038_v40 = vpack.c.bf16 %v219_v39, %v218_v38  ;;  %v221_v42 = vld [vmem:[%s1513_s3 + $0x78] sm:$0xff]  ;;  %v222_v44 = vld [vmem:[%s1513_s3 + $0x80] sm:$0xff]  ;;  %v223_v45 = vld [vmem:[%s1513_s3 + $0x88] sm:$0xff] }
  0x14   :  { %v1041_v43 = vpack.c.bf16 %v221_v42, %v220_v41  ;;  %v1044_v46 = vpack.c.bf16 %v223_v45, %v222_v44  ;;  %v224_v47 = vld [vmem:[%s1513_s3 + $0x90] sm:$0xff]  ;;  %v225_v48 = vld [vmem:[%s1513_s3 + $0x98] sm:$0xff]  ;;  %v845_v50 = vld [vmem:[%s1512_s2] ss:$0 sm:$0xff] }
  0x15   :  { %1024 = vmatpush1.bf16.msra.mxu1 %v1023_v25  ;;  %v1047_v49 = vpack.c.bf16 %v225_v48, %v224_v47  ;;  %v226_v59 = vld [vmem:[%s1513_s3 + $0xa0] sm:$0xff]  ;;  %v227_v60 = vld [vmem:[%s1513_s3 + $0xa8] sm:$0xff]  ;;  %v228_v63 = vld [vmem:[%s1513_s3 + $0xb0] sm:$0xff] }
  0x16   :  { %1025 = vmatprep.subr.bf16.mxu1 %v1151_v22  ;;  %v1050_v61 = vpack.c.bf16 %v227_v60, %v226_v59  ;;  %v229_v0 = vld [vmem:[%s1513_s3 + $0xb8] sm:$0xff]  ;;  %s1152_s3 = smov 64   ;;  %v1088_v20 = vld [vmem:[%s1515_s5 + $0x40] sm:$0xff]   ;;  %v1090_v23 = vld [vmem:[%s1515_s5 + $0x48] sm:$0xff]  }
  0x17   :  { %v1053_v3 = vpack.c.bf16 %v229_v0, %v228_v63  ;;  %v1089_v21 = vld [vmem:[%s1515_s5] sm:$0xff]   ;;  %895 = vmatprep.subr.bf16.mxu0 %v1088_v20  ;;  %v1091_v24 = vld [vmem:[%s1515_s5 + $0x8] sm:$0xff]   ;;  %v1092_v25 = vld [vmem:[%s1515_s5 + $0x50] sm:$0xff]  }
  0x18   :  { %v1093_v26 = vld [vmem:[%s1515_s5 + $0x10] sm:$0xff]   ;;  %v851_v27 = vld [vmem:[%s1514_s4] ss:$0 sm:$0xff]  ;;  %v1094_v39 = vld [vmem:[%s1515_s5 + $0x58] sm:$0xff]  }
  0x19   :  { %1027 = vmatpush1.bf16.msra.mxu1 %v1026_v28  ;;  %v1096_v44 = vld [vmem:[%s1515_s5 + $0x60] sm:$0xff]   ;;  %v1098_v48 = vld [vmem:[%s1515_s5 + $0x68] sm:$0xff]  }
  0x1a   :  { %1028 = vmatprep.subr.bf16.mxu1 %v1151_v22  ;;  %v1097_v45 = vld [vmem:[%s1515_s5 + $0x20] sm:$0xff]  }
  0x1d   :  { %1030 = vmatpush1.bf16.msra.mxu1 %v1029_v31 }
  0x1e   :  { %1031 = vmatprep.subr.bf16.mxu1 %v1151_v22 }
  0x21   :  { %1033 = vmatpush1.bf16.msra.mxu1 %v1032_v34 }
  0x22   :  { %1034 = vmatprep.subr.bf16.mxu1 %v1151_v22 }
  0x25   :  { %1036 = vmatpush1.bf16.msra.mxu1 %v1035_v37 }
  0x26   :  { %1037 = vmatprep.subr.bf16.mxu1 %v1151_v22 }
  0x29   :  { %1039 = vmatpush1.bf16.msra.mxu1 %v1038_v40  ;;  %v1095_v40 = vld [vmem:[%s1515_s5 + $0x18] sm:$0xff]  }
  0x2a   :  { %1040 = vmatprep.subr.bf16.mxu1 %v1151_v22 }
  0x2d   :  { %1042 = vmatpush1.bf16.msra.mxu1 %v1041_v43 }
  0x2e   :  { %1043 = vmatprep.subr.bf16.mxu1 %v1151_v22 }
  0x31   :  { %1045 = vmatpush1.bf16.msra.mxu1 %v1044_v46 }
  0x32   :  { %1046 = vmatprep.subr.bf16.mxu1 %v1151_v22 }
  0x35   :  { %1048 = vmatpush1.bf16.msra.mxu1 %v1047_v49  ;;  %v1099_v49 = vld [vmem:[%s1515_s5 + $0x28] sm:$0xff]  }
  0x36   :  { %1049 = vmatprep.subr.bf16.mxu1 %v1151_v22 }
  0x39   :  { %1051 = vmatpush1.bf16.msra.mxu1 %v1050_v61 }
  0x3a   :  { %1052 = vmatprep.subr.bf16.mxu1 %v1151_v22 }
  0x3d   :  { %1054 = vmatpush1.bf16.msra.mxu1 %v1053_v3 }
  0x3e   :  { %1055 = vmatprep.subr.bf16.mxu1 %v1151_v22 }
  0x74   :  { %v40_v12 = vpop.permute.xlu0 %39  ;;  %v57_v13 = vpop.permute.xlu1 %56 }
  0x75   :  { %43 = vst.msk [vmem:[#allocation2] sm:$0xff] %vm42_vm4, %v40_v12  ;;  %59 = vst.msk [vmem:[#allocation2 + $0x8] sm:$0xff] %vm42_vm4, %v57_v13 }
  0x78   :  { %v47_v14 = vpop.permute.xlu0 %46  ;;  %v63_v15 = vpop.permute.xlu1 %62 }
  0x79   :  { %50 = vst.msk [vmem:[#allocation2] sm:$0xff] %vm49_vm5, %v47_v14  ;;  %65 = vst.msk [vmem:[#allocation2 + $0x8] sm:$0xff] %vm49_vm5, %v63_v15 }
  0x80   :  { %v66_v16 = vld [vmem:[#allocation2] sm:$0xff]  ;;  %v67_v17 = vld [vmem:[#allocation2 + $0x8] sm:$0xff] }
  0x81   :  { %951 = vmatprep.mubr.msk.f32.mxu0 %vm79_vm6, %v66_v16 }
  0x82   :  { %952 = vmatmul.mubr.msk.f32.vlgmr.msra.gmra.mrb[0].mxu0 %vm79_vm6, %v67_v17 }
  0x83   :  { %896 = vmatpush3.bf16.msra.mxu0 %v1089_v21  ;;  %v1106_v21 = vld [vmem:[%s1515_s5 + $0x88] sm:$0xff]  }
  0x84   :  { %897 = vmatprep.subr.bf16.mxu0 %v1090_v23  ;;  %v1107_v23 = vld [vmem:[%s1515_s5 + $0x90] sm:$0xff]  }
  0x87   :  { %898 = vmatpush3.bf16.msra.mxu0 %v1091_v24  ;;  %v1108_v24 = vld [vmem:[%s1515_s5 + $0x98] sm:$0xff]  }
  0x88   :  { %899 = vmatprep.subr.bf16.mxu0 %v1092_v25  ;;  %v1109_v25 = vld [vmem:[%s1515_s5 + $0xa0] sm:$0xff]  }
  0x8b   :  { %900 = vmatpush3.bf16.msra.mxu0 %v1093_v26  ;;  %v1110_v26 = vld [vmem:[%s1515_s5 + $0xa8] sm:$0xff]  }
  0x8c   :  { %901 = vmatprep.subr.bf16.mxu0 %v1094_v39 }
  0x8f   :  { %902 = vmatpush3.bf16.msra.mxu0 %v1095_v40  ;;  %v739_v40 = vld [vmem:[%s1517_s7 + $0x30] sm:$0xff] }
  0x90   :  { %903 = vmatprep.subr.bf16.mxu0 %v1096_v44  ;;  %v742_v44 = vld [vmem:[%s1517_s7 + $0x48] sm:$0xff] }
  0x93   :  { %904 = vmatpush3.bf16.msra.mxu0 %v1097_v45 }
  0x94   :  { %905 = vmatprep.subr.bf16.mxu0 %v1098_v48 }
  0x97   :  { %906 = vmatpush3.bf16.msra.mxu0 %v1099_v49  ;;  %v745_v49 = vld [vmem:[%s1517_s7 + $0x60] sm:$0xff] }
 0x155   :  { %v953_v51 = vpop.f32.mrb[0].mxu0 }
 0x156   :  { %v162_v52 = vadd.f32 %v953_v51, %v845_v50  ;;  %v156_v53 = vpop.f32.mrb[1].mxu0  ;;  %v1101_v51 = vld [vmem:[%s1515_s5 + $0x30] sm:$0xff]  }
 0x157   :  { %v157_v54 = vadd.f32 %v845_v50, %v156_v53  ;;  %v1100_v50 = vld [vmem:[%s1515_s5 + $0x70] sm:$0xff]  }
 0x158   :  { %v168_v55 = vmin.f32 %v162_v52, 0.0  ;;  %vm166_vm8 = vcmp.gt.f32.partialorder %v162_v52, 0.0  ;;  %907 = vmatprep.subr.bf16.mxu0 %v1100_v50  ;;  %v746_v50 = vld [vmem:[%s1517_s7 + $0x68] sm:$0xff] }
 0x159   :  { %v167_v56 = vmin.f32 %v157_v54, 0.0  ;;  %vm165_vm9 = vcmp.gt.f32.partialorder %v157_v54, 0.0  ;;  %908 = vmatpush3.bf16.msra.mxu0 %v1101_v51  ;;  %v1074_v51 = vpack.c.bf16 %v746_v50, %v745_v49 }
 0x15a   :  { %v171_v57 = vmul.f32 1.442695, %v168_v55 }
 0x15b   :  { %v169_v58 = vmul.f32 1.442695, %v167_v56 }
 0x15c   :  { %1113 = vpow2.f32 %v171_v57 }
 0x15d   :  { %1115 = vpow2.f32 %v169_v58  ;;  %v1103_v58 = vld [vmem:[%s1515_s5 + $0x38] sm:$0xff]  }
 0x166   :  { %v1114_v62 = vpop.eup %1113 }
 0x167   :  { %v1116_v1 = vpop.eup %1115  ;;  %v850_v2 = vadd.f32 -1.0, %v1114_v62 }
 0x168   :  { %v849_v4 = vadd.f32 -1.0, %v1116_v1 }
 0x169   :  { %v176_v5 = vsel %vm166_vm8, %v162_v52, %v850_v2  ;;  %v1102_v52 = vld [vmem:[%s1515_s5 + $0x78] sm:$0xff]  }
 0x16a   :  { %179 = vst.msk [vmem:[#allocation3 + $0x8] sm:$0xff] %vm177_vm7, %v176_v5  ;;  %v175_v6 = vsel %vm165_vm9, %v157_v54, %v849_v4  ;;  %909 = vmatprep.subr.bf16.mxu0 %v1102_v52  ;;  %v747_v52 = vld [vmem:[%s1517_s7 + $0x70] sm:$0xff] }
 0x16b   :  { %178 = vst.msk [vmem:[#allocation3] sm:$0xff] %vm177_vm7, %v175_v6  ;;  %910 = vmatpush3.bf16.msra.mxu0 %v1103_v58  ;;  %v1154_v6 = vmov 1983009808  }
 0x16c   :  { %954 = vmatprep.subr.bf16.mxu0 %v1150_v18 }
 0x171   :  { %v186_v7 = vld [vmem:[#allocation3 + $0x9] sm:$0xff] }
 0x172   :  { %v182_v8 = vld [vmem:[#allocation3 + $0x8] sm:$0xff]  ;;  %191 = vrot.lane.b32.xlu1 %v186_v7, %s1152_s3  ;;  %v181_v12 = vld [vmem:[#allocation3] sm:$0xff]  ;;  %v428_v7 = vunpack.c.l.s4 %v1154_v6 }
 0x173   :  { %v199_v9 = vld [vmem:[#allocation3 + $0xa] sm:$0xff]  ;;  %v185_v10 = vld [vmem:[#allocation3 + $0x1] sm:$0xff]  ;;  %184 = vst.msk [vmem:[#allocation4 + $0x10] sm:$0xff] %vm177_vm7, %v182_v8  ;;  %183 = vst.msk [vmem:[#allocation4] sm:$0xff] %vm177_vm7, %v181_v12  ;;  %v430_v8 = vlaneseq }
 0x174   :  { %v198_v11 = vld [vmem:[#allocation3 + $0x2] sm:$0xff]  ;;  %201 = vst.msk [vmem:[#allocation4 + $0x18] sm:$0xff] %vm177_vm7, %v199_v9  ;;  %189 = vrot.lane.b32.xlu0 %v185_v10, %s1152_s3 }
 0x175   :  { %200 = vst.msk [vmem:[#allocation4 + $0x8] sm:$0xff] %vm177_vm7, %v198_v11  ;;  %v429_v11 = vunpack.c.0.s8 %v428_v7  ;;  %v431_v12 = vshrl.u32 %v430_v8, 7  ;;  %v888_v7 = vld [vmem:[%s1518_s8] ss:$0 sm:$0xff] }
 0x17b   :  { %v205_v17 = vld [vmem:[#allocation4 + $0x18] sm:$0xff] }
 0x17c   :  { %v203_v13 = vld [vmem:[#allocation4 + $0x8] sm:$0xff] }
 0x17d   :  { %852 = vmatprep.mubr.msk.f32.mxu1 %vm177_vm7, %v203_v13  ;;  %v432_v13 = vsub.s32 %v429_v11, %v431_v12 }
 0x1e4   :  { %v192_v14 = vpop.permute.xlu1 %191 }
 0x1e5   :  { %197 = vst.msk [vmem:[#allocation4 + $0x10] sm:$0xff] %vm195_vm10, %v192_v14 }
 0x1e6   :  { %v190_v15 = vpop.permute.xlu0 %189 }
 0x1e7   :  { %196 = vst.msk [vmem:[#allocation4] sm:$0xff] %vm195_vm10, %v190_v15 }
 0x1ec   :  { %v204_v19 = vld [vmem:[#allocation4 + $0x10] sm:$0xff] }
 0x1ee   :  { %v202_v16 = vld [vmem:[#allocation4] sm:$0xff] }
 0x1ef   :  { %308 = vmatmul.mubr.f32.vlgmr.msra.gmra.mrb[0].mxu1 %v202_v16 }
 0x1f0   :  { %853 = vmatprep.mubr.msk.f32.mxu1 %vm177_vm7, %v205_v17 }
 0x1f3   :  { %313 = vmatmul.mubr.f32.gmra.mrb[2].mxu1 %v204_v19  ;;  %v1105_v19 = vld [vmem:[%s1515_s5 + $0x80] sm:$0xff]  }
 0x1f4   :  { %1006 = vmatprep.mubr.msk.f32.mxu1 %vm1153_vm14, %v1150_v18 }
 0x2c2   :  { %v309_v28 = vpop.f32.mrb[0].mxu1 }
 0x2c3   :  { %v310_v29 = vadd.f32 %v851_v27, %v309_v28  ;;  %v311_v30 = vpop.f32.mrb[1].mxu1 }
 0x2c5   :  { %v320_v31 = vmin.f32 %v310_v29, 0.0  ;;  %vm318_vm11 = vcmp.gt.f32.partialorder %v310_v29, 0.0 }
 0x2c6   :  { %v314_v32 = vpop.f32.mrb[2].mxu1 }
 0x2c7   :  { %v322_v33 = vmul.f32 1.442695, %v320_v31  ;;  %v315_v34 = vadd.f32 %v851_v27, %v314_v32  ;;  %v316_v35 = vpop.f32.mrb[3].mxu1  ;;  %v1111_v27 = vld [vmem:[%s1515_s5 + $0xb0] sm:$0xff]   ;;  %v733_v32 = vld [vmem:[%s1517_s7] sm:$0xff] }
 0x2c9   :  { %1117 = vpow2.f32 %v322_v33  ;;  %v321_v36 = vmin.f32 %v315_v34, 0.0  ;;  %vm319_vm12 = vcmp.gt.f32.partialorder %v315_v34, 0.0  ;;  %v734_v33 = vld [vmem:[%s1517_s7 + $0x8] sm:$0xff] }
 0x2ca   :  { %v1056_v35 = vpack.c.bf16 %v734_v33, %v733_v32 }
 0x2cb   :  { %v324_v37 = vmul.f32 1.442695, %v321_v36 }
 0x2cc   :  { %1057 = vmatpush3.bf16.msra.mxu1 %v1056_v35 }
 0x2cd   :  { %1119 = vpow2.f32 %v324_v37  ;;  %1058 = vmatprep.subr.bf16.mxu1 %v1151_v22  ;;  %v737_v37 = vld [vmem:[%s1517_s7 + $0x20] sm:$0xff] }
 0x2d3   :  { %v1118_v38 = vpop.eup %1117 }
 0x2d4   :  { %v854_v41 = vadd.f32 -1.0, %v1118_v38  ;;  %v738_v38 = vld [vmem:[%s1517_s7 + $0x28] sm:$0xff] }
 0x2d5   :  { %v1062_v39 = vpack.c.bf16 %v738_v38, %v737_v37 }
 0x2d6   :  { %v328_v42 = vsel %vm318_vm11, %v310_v29, %v854_v41  ;;  %v1112_v29 = vld [vmem:[%s1515_s5 + $0xb8] sm:$0xff]  }
 0x2d7   :  { %v1120_v43 = vpop.eup %1119  ;;  %330 = vst.msk [vmem:[#allocation5] sm:$0xff] %vm177_vm7, %v328_v42  ;;  %v740_v41 = vld [vmem:[%s1517_s7 + $0x38] sm:$0xff] }
 0x2d8   :  { %v855_v46 = vadd.f32 -1.0, %v1120_v43  ;;  %v1065_v42 = vpack.c.bf16 %v740_v41, %v739_v40  ;;  %v741_v43 = vld [vmem:[%s1517_s7 + $0x40] sm:$0xff] }
 0x2d9   :  { %v1068_v45 = vpack.c.bf16 %v742_v44, %v741_v43 }
 0x2da   :  { %v329_v47 = vsel %vm319_vm12, %v315_v34, %v855_v46  ;;  %v735_v34 = vld [vmem:[%s1517_s7 + $0x10] sm:$0xff] }
 0x2db   :  { %331 = vst.msk [vmem:[#allocation5 + $0x8] sm:$0xff] %vm177_vm7, %v329_v47  ;;  %v743_v46 = vld [vmem:[%s1517_s7 + $0x50] sm:$0xff]  ;;  %v744_v47 = vld [vmem:[%s1517_s7 + $0x58] sm:$0xff] }
 0x2dc   :  { %v1071_v48 = vpack.c.bf16 %v744_v47, %v743_v46 }
 0x2de   :  { %v857_v53 = vld.sshfl [vmem:[#allocation5 + $0x3] sm:$0x1 pattern:$0x76325410]  ;;  %v349_v54 = vld [vmem:[#allocation5 + $0x2] sm:$0x1] }
 0x2df   :  { %360 = vrot.lane.b32.xlu1 %v857_v53, %s1152_s3  ;;  %v856_v55 = vld.sshfl [vmem:[#allocation5 + $0x1] sm:$0x1 pattern:$0x76325410]  ;;  %350 = vst.msk [vmem:[#allocation6 + $0x2] sm:$0x1] %vm333_vm13, %v349_v54 }
 0x2e0   :  { %v332_v56 = vld [vmem:[#allocation5] sm:$0x1]  ;;  %344 = vrot.lane.b32.xlu0 %v856_v55, %s1152_s3  ;;  %v364_v57 = vld [vmem:[#allocation5 + $0x4] sm:$0x1]  ;;  %v748_v53 = vld [vmem:[%s1517_s7 + $0x78] sm:$0xff] }
 0x2e1   :  { %334 = vst.msk [vmem:[#allocation6] sm:$0x1] %vm333_vm13, %v332_v56  ;;  %365 = vst.msk [vmem:[#allocation6 + $0x4] sm:$0x1] %vm333_vm13, %v364_v57  ;;  %v1077_v54 = vpack.c.bf16 %v748_v53, %v747_v52 }
 0x2e2   :  { %v859_v59 = vld.sshfl [vmem:[#allocation5 + $0x9] sm:$0x1 pattern:$0x76325410]  ;;  %v379_v60 = vld [vmem:[#allocation5 + $0x8] sm:$0x1] }
 0x2e3   :  { %390 = vrot.lane.b32.xlu1 %v859_v59, %s1152_s3  ;;  %v858_v61 = vld.sshfl [vmem:[#allocation5 + $0x5] sm:$0x1 pattern:$0x76325410]  ;;  %380 = vst.msk [vmem:[#allocation6 + $0x1] sm:$0x1] %vm333_vm13, %v379_v60 }
 0x2e4   :  { %v409_v62 = vld [vmem:[#allocation5 + $0xc] sm:$0x1]  ;;  %375 = vrot.lane.b32.xlu0 %v858_v61, %s1152_s3  ;;  %v394_v63 = vld [vmem:[#allocation5 + $0xa] sm:$0x1]  ;;  %v862_v60 = vld [vmem:[%s1516_s6] ss:$0 sm:$0xff] }
 0x2e5   :  { %410 = vst.msk [vmem:[#allocation6 + $0x5] sm:$0x1] %vm333_vm13, %v409_v62  ;;  %395 = vst.msk [vmem:[#allocation6 + $0x3] sm:$0x1] %vm333_vm13, %v394_v63  ;;  %s834_s6 = sshll.u32 %s1155_s17, 4  ;;  %s835_s6 = int_to_ptr.vmem [resolvable:$true] %s834_s6 }
 0x2e6   :  { %v861_v0 = vld.sshfl [vmem:[#allocation5 + $0xd] sm:$0x1 pattern:$0x76325410]  ;;  %s1123_s18 = scalar_lea.vmem %s835_s6, 32  ;;  %p1128_p1 = scmp.lt.s32.totalorder %s835_s6, %s835_s6 }
 0x2e7   :  { %420 = vrot.lane.b32.xlu1 %v861_v0, %s1152_s3  ;;  %v860_v1 = vld.sshfl [vmem:[#allocation5 + $0xb] sm:$0x1 pattern:$0x76325410]  ;;  %p1124_p0 = scmp.ne.s32.totalorder %s835_s6, %s1123_s18  ;;  %p1129_p2 = scmp.lt.s32.totalorder %s1123_s18, %s1123_s18 }
 0x2e8   :  { %405 = vrot.lane.b32.xlu0 %v860_v1, %s1152_s3 }
 0x2e9   :  { %p1130_p3 = por %p1129_p2, %p1128_p1 }
 0x2eb   :  { %p1131_p4 = pnand %p1130_p3, %p1124_p0 }
 0x351   :  { %v361_v2 = vpop.permute.xlu1 %360 }
 0x352   :  { %363 = vst.msk [vmem:[#allocation6 + $0x2] sm:$0x1] %vm347_vm15, %v361_v2  ;;  %v345_v3 = vpop.permute.xlu0 %344 }
 0x353   :  { %348 = vst.msk [vmem:[#allocation6] sm:$0x1] %vm347_vm15, %v345_v3 }
 0x355   :  { %v391_v4 = vpop.permute.xlu1 %390 }
 0x356   :  { %393 = vst.msk [vmem:[#allocation6 + $0x1] sm:$0x1] %vm347_vm15, %v391_v4  ;;  %v376_v5 = vpop.permute.xlu0 %375 }
 0x357   :  { %378 = vst.msk [vmem:[#allocation6 + $0x4] sm:$0x1] %vm347_vm15, %v376_v5 }
 0x359   :  { %v421_v9 = vpop.permute.xlu1 %420 }
 0x35a   :  { %423 = vst.msk [vmem:[#allocation6 + $0x5] sm:$0x1] %vm347_vm15, %v421_v9  ;;  %v406_v10 = vpop.permute.xlu0 %405 }
 0x35b   :  { %408 = vst.msk [vmem:[#allocation6 + $0x3] sm:$0x1] %vm347_vm15, %v406_v10 }
 0x362   :  { %v424_v14 = vld [vmem:[#allocation6] sm:$0x3f] }
 0x363   :  { %v433_v15 = vrot.slane %v424_v14, %v432_v13  ;;  %v426_v28 = vcombine.high %v424_v14, %v424_v14 }
 0x365   :  { %v441_v16 = vcombine.high %v433_v15, %v433_v15  ;;  %v445_v20 = vpack.c.bf16 %v433_v15, %v433_v15  ;;  %v440_v30 = vrot.slane %v426_v28, %v432_v13 }
 0x367   :  { %v446_v17 = vpack.c.bf16 %v441_v16, %v441_v16  ;;  %v447_v31 = vpack.c.bf16 %v440_v30, %v440_v30 }
 0x369   :  { %679 = vmatprep.mubr.bf16.mxu0 %v446_v17 }
 0x36a   :  { %680 = vmatmul.mubr.bf16.vlgmr.msra.gmra.mrb[4].mxu0 %v445_v20 }
 0x36b   :  { %955 = vmatpush3.bf16.msra.mxu0 %v1105_v19  ;;  %970 = vmatprep.mubr.msk.bf16.mxu0 %vm1153_vm14, %v1150_v18 }
 0x36c   :  { %956 = vmatprep.subr.bf16.mxu0 %v1150_v18 }
 0x36f   :  { %957 = vmatpush3.bf16.msra.mxu0 %v1106_v21 }
 0x370   :  { %958 = vmatprep.subr.bf16.mxu0 %v1150_v18 }
 0x373   :  { %959 = vmatpush3.bf16.msra.mxu0 %v1107_v23 }
 0x374   :  { %960 = vmatprep.subr.bf16.mxu0 %v1150_v18 }
 0x377   :  { %961 = vmatpush3.bf16.msra.mxu0 %v1108_v24 }
 0x378   :  { %962 = vmatprep.subr.bf16.mxu0 %v1150_v18 }
 0x37b   :  { %963 = vmatpush3.bf16.msra.mxu0 %v1109_v25 }
 0x37c   :  { %964 = vmatprep.subr.bf16.mxu0 %v1150_v18 }
 0x37f   :  { %965 = vmatpush3.bf16.msra.mxu0 %v1110_v26 }
 0x380   :  { %966 = vmatprep.subr.bf16.mxu0 %v1150_v18 }
 0x383   :  { %967 = vmatpush3.bf16.msra.mxu0 %v1111_v27 }
 0x384   :  { %968 = vmatprep.subr.bf16.mxu0 %v1150_v18  ;;  %v736_v18 = vld [vmem:[%s1517_s7 + $0x18] sm:$0xff] }
 0x385   :  { %v1059_v36 = vpack.c.bf16 %v736_v18, %v735_v34 }
 0x387   :  { %969 = vmatpush3.bf16.msra.mxu0 %v1112_v29  ;;  %1060 = vmatpush3.bf16.msra.mxu1 %v1059_v36 }
 0x388   :  { %1061 = vmatprep.subr.bf16.mxu1 %v1151_v22 }
 0x38a   :  { %971 = vmatmul.mubr.bf16.vlgmr.msra.gmra.mrb[8].mxu0 %v447_v31 }
 0x38b   :  { %1063 = vmatpush3.bf16.msra.mxu1 %v1062_v39 }
 0x38c   :  { %1064 = vmatprep.subr.bf16.mxu1 %v1151_v22 }
 0x38f   :  { %1066 = vmatpush3.bf16.msra.mxu1 %v1065_v42 }
 0x390   :  { %1067 = vmatprep.subr.bf16.mxu1 %v1151_v22 }
 0x393   :  { %1069 = vmatpush3.bf16.msra.mxu1 %v1068_v45 }
 0x394   :  { %1070 = vmatprep.subr.bf16.mxu1 %v1151_v22 }
 0x397   :  { %1072 = vmatpush3.bf16.msra.mxu1 %v1071_v48 }
 0x398   :  { %1073 = vmatprep.subr.bf16.mxu1 %v1151_v22 }
 0x39b   :  { %1075 = vmatpush3.bf16.msra.mxu1 %v1074_v51 }
 0x39c   :  { %1076 = vmatprep.subr.bf16.mxu1 %v1151_v22 }
 0x39f   :  { %1078 = vmatpush3.bf16.msra.mxu1 %v1077_v54 }
 0x43d   :  { %v911_v55 = vpop.f32.mrb[4].mxu0 }
 0x43e   :  { %v912_v56 = vpop.f32.mrb[5].mxu0 }
 0x43f   :  { %v913_v57 = vadd.f32 %v912_v56, %v911_v55  ;;  %v914_v58 = vpop.f32.mrb[6].mxu0 }
 0x440   :  { %v915_v59 = vpop.f32.mrb[7].mxu0 }
 0x441   :  { %v682_v22 = vadd.f32 %v913_v57, %v862_v60 }
 0x45d   :  { %v721_v61 = vpop.f32.mrb[8].mxu0 }
 0x45e   :  { %v722_v62 = vadd.f32 %v721_v61, %v682_v22  ;;  %v972_v63 = vpop.f32.mrb[9].mxu0 }
 0x45f   :  { %v724_v0 = vpop.f32.mrb[10].mxu0 }
 0x460   :  { %v728_v1 = vmin.f32 %v722_v62, 0.0  ;;  %v973_v2 = vpop.f32.mrb[11].mxu0  ;;  %vm727_vm0 = vcmp.gt.f32.partialorder %v722_v62, 0.0 }
 0x462   :  { %v729_v3 = vmul.f32 1.442695, %v728_v1 }
 0x464   :  { %1121 = vpow2.f32 %v729_v3 }
 0x46e   :  { %v1122_v4 = vpop.eup %1121 }
 0x46f   :  { %v887_v5 = vadd.f32 -1.0, %v1122_v4 }
 0x471   :  { %v732_v6 = vsel %vm727_vm0, %v722_v62, %v887_v5 }
 0x472   :  { %1007 = vmatmul.mubr.f32.vlgmr.msra.gmra.mrb[4].mxu1 %v732_v6 }
 0x545   :  { %v822_v8 = vpop.f32.mrb[4].mxu1 }
 0x546   :  { %v823_v9 = vadd.f32 %v888_v7, %v822_v8  ;;  %v1008_v10 = vpop.f32.mrb[5].mxu1 }
 0x548   :  { %827 = vst.msk [vmem:[#allocation7] sm:$0x3] %vm826_vm1, %v823_v9 }
 0x549   :  { %1134 = shalt.err (!%p1131_p4)
}
 0x54a   :  { %s1135_s20 = scalar_lea.hbm %s1519_s9, 32 }
 0x54b   :  { %p1136_p5 = scmp.ne.s32.totalorder %s1519_s9, %s1135_s20  ;;  %p1139_p6 = scmp.lt.u32.totalorder %s1135_s20, %s1519_s9 }
 0x54d   :  { %p1141_p7 = pnand %p1139_p6, %p1136_p5 }
 0x54f   :  { %1144 = shalt.err (!%p1141_p7)
}
 0x550   :  { %837 = dma.vmem_to_hbm [thread:$0]  %s835_s6, 32, %s1519_s9, [#allocation8]  }
 0x551   :  { %1145 = dma.done.wait [#allocation8], 32  }
 0x552   :  { %1146 = vsyncadd [#allocation8], 4294967264 }
 0x553   :  { %841 = vsyncpa [#allocation8], 1 }

</bundles_post_ra>
